<compile_context>
chip_gen: v7x
topology: tpu7x:2x2x1
jax: 0.10.0
libtpu: 0.0.40
codegen_flags: <defaults>
</compile_context>

<pallas_src>
import functools

import jax
import jax.numpy as jnp
from jax.experimental import pallas as pl
from jax.experimental.pallas import tpu as pltpu


def _round_up(x, m):
    return ((x + m - 1) // m) * m


def _budget_and_vmem_limit():
    """(per-input tile byte budget, explicit vmem limit), sized per TPU generation."""
    cap = 128 << 20
    try:
        cap = int(getattr(pltpu.get_tpu_info(), "vmem_capacity_bytes", cap))
    except Exception:
        pass
    if cap <= (64 << 20):            # v7x-class: 64 MiB physical VMEM per core
        return (2 << 20), (48 << 20)
    return (4 << 20), (64 << 20)     # v5e / v6e: 128 MiB physical VMEM


# ----------------------------------------------------------------------------
# Plane-batched kernels: one grid step = (nc_tile, H, W) block of whole planes.
# ----------------------------------------------------------------------------

def _tv_planes_kernel(p_ref, out_ref):
    p = p_ref[...]                                        # (nc_t, H, W), native dtype
    y = jnp.abs(p[:, 1:, :] - p[:, :-1, :])               # vertical diffs
    x = jnp.abs(p[:, :, 1:] - p[:, :, :-1])               # horizontal diffs
    out_ref[0, 0] = jnp.sum(y.astype(jnp.float32))
    out_ref[0, 1] = jnp.sum(x.astype(jnp.float32))


def _wtv_planes_kernel(p_ref, w_ref, out_ref):
    p = p_ref[...]
    w = w_ref[...]
    wy = w[:, :-1, :]                                     # weight[:, :, :-1, :]
    wx = w[:, :, :-1]                                     # weight[:, :, :, :-1]
    y = jnp.abs(p[:, 1:, :] - p[:, :-1, :]) * wy
    x = jnp.abs(p[:, :, 1:] - p[:, :, :-1]) * wx
    out_ref[0, 0] = jnp.sum(y.astype(jnp.float32))
    out_ref[0, 1] = jnp.sum(x.astype(jnp.float32))
    out_ref[0, 2] = jnp.sum(wy.astype(jnp.float32))       # 'mean' denominators
    out_ref[0, 3] = jnp.sum(wx.astype(jnp.float32))


# ----------------------------------------------------------------------------
# Row-tiled kernels: grid = (NC, H_tiles), carried last row across H tiles.
# ----------------------------------------------------------------------------

def _tv_rows_kernel(p_ref, out_ref, acc_ref, carry_p, *, H, tile_h, need_h_mask):
    ht = pl.program_id(1)
    p = p_ref[...]                                        # (tile_h, W), native dtype

    @pl.when(ht == 0)
    def _():
        acc_ref[0] = 0.0
        acc_ref[1] = 0.0
        carry_p[...] = p[0:1, :]      # boundary diff at global row 0 becomes 0

    y_edge = jnp.abs(p[0:1, :] - carry_p[...])            # cross-tile vertical pair
    y_in = jnp.abs(p[1:, :] - p[:-1, :])                  # intra-tile vertical pairs
    x_in = jnp.abs(p[:, 1:] - p[:, :-1])                  # horizontal pairs

    if need_h_mask:                                       # only for a partial last tile
        row0 = ht * tile_h
        r_pair = jax.lax.broadcasted_iota(jnp.int32, (tile_h - 1, 1), 0) + 1 + row0
        r_all = jax.lax.broadcasted_iota(jnp.int32, (tile_h, 1), 0) + row0
        y_in = jnp.where(r_pair < H, y_in, 0)
        x_in = jnp.where(r_all < H, x_in, 0)

    acc_ref[0] += jnp.sum(y_edge.astype(jnp.float32)) + jnp.sum(y_in.astype(jnp.float32))
    acc_ref[1] += jnp.sum(x_in.astype(jnp.float32))

    carry_p[...] = p[tile_h - 1:tile_h, :]

    @pl.when(ht == pl.num_programs(1) - 1)
    def _():
        out_ref[0, 0] = acc_ref[0]
        out_ref[0, 1] = acc_ref[1]


def _wtv_rows_kernel(p_ref, w_ref, out_ref, acc_ref, carry_p, carry_w, *,
                     H, tile_h, need_h_mask):
    ht = pl.program_id(1)
    p = p_ref[...]
    w = w_ref[...]

    @pl.when(ht == 0)
    def _():
        for k in range(4):
            acc_ref[k] = 0.0
        carry_p[...] = p[0:1, :]
        carry_w[...] = w[0:1, :]

    # vertical pair (g-1, g) is weighted by weight[g-1] (== weight[:, :, :-1, :])
    y_edge = jnp.abs(p[0:1, :] - carry_p[...]) * carry_w[...]
    y_in = jnp.abs(p[1:, :] - p[:-1, :]) * w[:-1, :]
    x_in = jnp.abs(p[:, 1:] - p[:, :-1]) * w[:, :-1]
    xw = w[:, :-1]

    row0 = ht * tile_h
    r_all = jax.lax.broadcasted_iota(jnp.int32, (tile_h, 1), 0) + row0
    yw = jnp.where(r_all < H - 1, w, 0)                   # weights of rows 0..H-2

    if need_h_mask:                                       # only for a partial last tile
        r_pair = jax.lax.broadcasted_iota(jnp.int32, (tile_h - 1, 1), 0) + 1 + row0
        in_h = r_all < H
        y_in = jnp.where(r_pair < H, y_in, 0)
        x_in = jnp.where(in_h, x_in, 0)
        xw = jnp.where(in_h, xw, 0)

    acc_ref[0] += jnp.sum(y_edge.astype(jnp.float32)) + jnp.sum(y_in.astype(jnp.float32))
    acc_ref[1] += jnp.sum(x_in.astype(jnp.float32))
    acc_ref[2] += jnp.sum(yw.astype(jnp.float32))
    acc_ref[3] += jnp.sum(xw.astype(jnp.float32))

    carry_p[...] = p[tile_h - 1:tile_h, :]
    carry_w[...] = w[tile_h - 1:tile_h, :]

    @pl.when(ht == pl.num_programs(1) - 1)
    def _():
        for k in range(4):
            out_ref[0, k] = acc_ref[k]


# ----------------------------------------------------------------------------
# Tiling heuristics + wrapper
# ----------------------------------------------------------------------------

def _pick_tile_h(H, W, itemsize, budget):
    """Largest multiple-of-8 tile height within `budget` bytes (VMEM-padded lanes),
    preferring a divisor of H so the partial-last-tile mask can be elided."""
    row_bytes = _round_up(W, 128) * itemsize
    rows = max(8, (budget // max(1, row_bytes)) // 8 * 8)
    if rows >= H:
        return H
    for cand in range(rows, max(7, rows // 2 - 1), -8):   # divisor only if >= rows/2
        if H % cand == 0:
            return cand
    return rows


def weighted_tv_loss(pred, weight=None, loss_weight=1.0, reduction="mean",
                     tile_h=None, nc_tile=None):
    """Matches basicsr WeightedTVLoss.forward(pred, weight) semantics."""
    if reduction not in ("mean", "sum"):
        raise ValueError(
            f"Unsupported reduction mode: {reduction}. Supported ones are: mean | sum")
    N, C, H, W = pred.shape
    if H < 2 or W < 2:
        # TODO(synk): PyTorch yields NaN here ('mean' over an empty slice); we reject instead.
        raise ValueError("WeightedTVLoss Pallas kernel requires H >= 2 and W >= 2.")
    if weight is not None and weight.shape != pred.shape:
        raise ValueError("weight must have the same shape as pred")

    NC = N * C
    itemsize = jnp.dtype(pred.dtype).itemsize
    budget, vmem_limit = _budget_and_vmem_limit()
    n_acc = 2 if weight is None else 4

    p3 = pred.reshape(NC, H, W)                            # native dtype, contiguous
    w3 = None if weight is None else weight.reshape(NC, H, W)

    # VMEM footprint of one plane (lanes pad to 128, sublanes to 8).
    plane_vmem = _round_up(H, 8) * _round_up(W, 128) * itemsize
    use_planes = (tile_h is None) and (nc_tile is not None or plane_vmem <= budget)

    cparams_kwargs = dict(vmem_limit_bytes=vmem_limit)

    if use_planes:
        # --- plane-batched path: grid over groups of whole (n, c) planes -----
        if nc_tile is None:
            nct = max(1, min(NC, budget // max(plane_vmem, 1)))
            d = nct
            while NC % d:                                  # prefer a divisor of NC
                d -= 1
            if 2 * d >= nct:
                nct = d
        else:
            nct = max(1, min(int(nc_tile), NC))
        groups = -(-NC // nct)
        NC_pad = groups * nct
        if NC_pad != NC:                                   # zero planes contribute 0
            padding = ((0, NC_pad - NC), (0, 0), (0, 0))
            p3 = jnp.pad(p3, padding)
            if w3 is not None:
                w3 = jnp.pad(w3, padding)

        in_spec = pl.BlockSpec((nct, H, W), lambda g: (g, 0, 0))
        if weight is None:
            kern, in_specs, operands = _tv_planes_kernel, [in_spec], (p3,)
        else:
            kern, in_specs, operands = _wtv_planes_kernel, [in_spec, in_spec], (p3, w3)

        partials = pl.pallas_call(
            kern,
            out_shape=jax.ShapeDtypeStruct((groups, n_acc), jnp.float32),
            grid_spec=pltpu.PrefetchScalarGridSpec(
                num_scalar_prefetch=0,
                grid=(groups,),
                in_specs=in_specs,
                out_specs=pl.BlockSpec((1, n_acc), lambda g: (g, 0),
                                       memory_space=pltpu.MemorySpace.SMEM),
            ),
            compiler_params=pltpu.CompilerParams(
                dimension_semantics=("parallel",), **cparams_kwargs),
        )(*operands)
    else:
        # --- row-tiled path: grid = (NC, H_tiles), carried last row ----------
        if tile_h is None:
            tH = _pick_tile_h(H, W, itemsize, budget)
        else:
            tH = int(tile_h)
            if tH != H and (tH % 8 != 0 or tH > H):
                raise ValueError("tile_h must equal H or be a multiple of 8 that is <= H")
        HT = -(-H // tH)
        need_h_mask = (H % tH) != 0

        in_spec = pl.BlockSpec((None, tH, W), lambda nc, ht: (nc, ht, 0))
        if weight is None:
            kern = functools.partial(_tv_rows_kernel, H=H, tile_h=tH,
                                     need_h_mask=need_h_mask)
            in_specs = [in_spec]
            scratch = [pltpu.SMEM((n_acc,), jnp.float32),
                       pltpu.VMEM((1, W), p3.dtype)]
            operands = (p3,)
        else:
            kern = functools.partial(_wtv_rows_kernel, H=H, tile_h=tH,
                                     need_h_mask=need_h_mask)
            in_specs = [in_spec, in_spec]
            scratch = [pltpu.SMEM((n_acc,), jnp.float32),
                       pltpu.VMEM((1, W), p3.dtype),
                       pltpu.VMEM((1, W), w3.dtype)]
            operands = (p3, w3)

        partials = pl.pallas_call(
            kern,
            out_shape=jax.ShapeDtypeStruct((NC, n_acc), jnp.float32),
            grid_spec=pltpu.PrefetchScalarGridSpec(
                num_scalar_prefetch=0,
                grid=(NC, HT),
                in_specs=in_specs,
                out_specs=pl.BlockSpec((1, n_acc), lambda nc, ht: (nc, 0),
                                       memory_space=pltpu.MemorySpace.SMEM),
                scratch_shapes=scratch,
            ),
            compiler_params=pltpu.CompilerParams(
                dimension_semantics=("parallel", "arbitrary"), **cparams_kwargs),
        )(*operands)

    sums = jnp.sum(partials, axis=0)                       # reduce partials in f32
    if weight is None:
        if reduction == "mean":
            y_val = sums[0] / jnp.float32(NC * (H - 1) * W)
            x_val = sums[1] / jnp.float32(NC * H * (W - 1))
        else:
            y_val, x_val = sums[0], sums[1]
    else:
        if reduction == "mean":
            y_val = sums[0] / sums[2]
            x_val = sums[1] / sums[3]
        else:
            y_val, x_val = sums[0], sums[1]
    # The torch module scales each of y_diff / x_diff by loss_weight.
    return loss_weight * x_val + loss_weight * y_val


if __name__ == "__main__":
    key = jax.random.PRNGKey(0)
    k1, k2 = jax.random.split(key)

    def ref_tv(p):
        return (jnp.abs(p[:, :, :, :-1] - p[:, :, :, 1:]).mean()
                + jnp.abs(p[:, :, :-1, :] - p[:, :, 1:, :]).mean())

    def ref_wtv(p, w):
        yw, xw = w[:, :, :-1, :], w[:, :, :, :-1]
        return ((jnp.abs(p[:, :, :, :-1] - p[:, :, :, 1:]) * xw).sum() / xw.sum()
                + (jnp.abs(p[:, :, :-1, :] - p[:, :, 1:, :]) * yw).sum() / yw.sum())

    # Small planes -> plane-batched path (all 8 planes in one grid step).
    pred = jax.random.normal(k1, (2, 4, 16, 16), dtype=jnp.float32)
    w = jax.random.uniform(k2, (2, 4, 16, 16), dtype=jnp.float32)

    loss = jax.block_until_ready(weighted_tv_loss(pred))
    assert jnp.allclose(loss, ref_tv(pred), atol=1e-5, rtol=1e-5), (loss, ref_tv(pred))

    loss_w = jax.block_until_ready(weighted_tv_loss(pred, weight=w))
    assert jnp.allclose(loss_w, ref_wtv(pred, w), atol=1e-5, rtol=1e-5), (loss_w, ref_wtv(pred, w))

    # Plane-batched path where NC (=6) needs zero-padding to a multiple of nc_tile (=4).
    pred_p = jax.random.normal(k2, (2, 3, 16, 16), dtype=jnp.float32)
    w_p = jax.random.uniform(k1, (2, 3, 16, 16), dtype=jnp.float32)
    loss_p = jax.block_until_ready(weighted_tv_loss(pred_p, weight=w_p, nc_tile=4))
    assert jnp.allclose(loss_p, ref_wtv(pred_p, w_p), atol=1e-5, rtol=1e-5)
    loss_p_u = jax.block_until_ready(weighted_tv_loss(pred_p, nc_tile=4))
    assert jnp.allclose(loss_p_u, ref_tv(pred_p), atol=1e-5, rtol=1e-5)

    # Row-tiled path: cross-tile carry + partial last tile (40 % 16 != 0).
    pred_big = jax.random.normal(k1, (1, 3, 40, 24), dtype=jnp.float32)
    w_big = jax.random.uniform(k2, (1, 3, 40, 24), dtype=jnp.float32)
    loss_big = jax.block_until_ready(weighted_tv_loss(pred_big, tile_h=16))
    assert jnp.allclose(loss_big, ref_tv(pred_big), atol=1e-5, rtol=1e-5)
    loss_big_w = jax.block_until_ready(weighted_tv_loss(pred_big, weight=w_big, tile_h=16))
    assert jnp.allclose(loss_big_w, ref_wtv(pred_big, w_big), atol=1e-5, rtol=1e-5)

    # Row-tiled path where tile_h divides H (mask-free interior) + 'sum' reduction.
    loss_div = jax.block_until_ready(
        weighted_tv_loss(pred_big, weight=w_big, reduction="sum", tile_h=8))
    ref_div = ((jnp.abs(pred_big[:, :, :, :-1] - pred_big[:, :, :, 1:]) * w_big[:, :, :, :-1]).sum()
               + (jnp.abs(pred_big[:, :, :-1, :] - pred_big[:, :, 1:, :]) * w_big[:, :, :-1, :]).sum())
    assert jnp.allclose(loss_div, ref_div, atol=1e-3, rtol=1e-4)

    print("KERNEL_OK")
</pallas_src>

<mosaic_0001>
module attributes {stable_mosaic.version = 11 : i64} {
  func.func @_tv_planes_kernel(%arg0: i32, %arg1: memref<8x16x16xf32, #tpu.memory_space<vmem>>, %arg2: memref<1x2xf32, #tpu.memory_space<smem>>) attributes {dimension_semantics = [#tpu.dimension_semantics<parallel>], iteration_bounds = array<i64: 1>, scalar_prefetch = 0 : i64, scratch_operands = 0 : i64, tpu.core_type = #tpu.core_type<tc>, window_params = [{transform_indices = @transform_0, window_bounds = array<i64: 8, 16, 16>}, {transform_indices = @transform_1, window_bounds = array<i64: 1, 2>}]} {
    %c0 = arith.constant 0 : index
    %c0_0 = arith.constant 0 : index
    %c0_1 = arith.constant 0 : index
    %0 = vector.load %arg1[%c0, %c0_0, %c0_1] : memref<8x16x16xf32, #tpu.memory_space<vmem>>, vector<8x16x16xf32>
    %1 = vector.extract_strided_slice %0 {offsets = [0, 1, 0], sizes = [8, 15, 16], strides = [1, 1, 1]} : vector<8x16x16xf32> to vector<8x15x16xf32>
    %2 = vector.extract_strided_slice %0 {offsets = [0, 0, 0], sizes = [8, 15, 16], strides = [1, 1, 1]} : vector<8x16x16xf32> to vector<8x15x16xf32>
    %3 = arith.subf %1, %2 : vector<8x15x16xf32>
    %4 = math.absf %3 : vector<8x15x16xf32>
    %5 = vector.extract_strided_slice %0 {offsets = [0, 0, 1], sizes = [8, 16, 15], strides = [1, 1, 1]} : vector<8x16x16xf32> to vector<8x16x15xf32>
    %6 = vector.extract_strided_slice %0 {offsets = [0, 0, 0], sizes = [8, 16, 15], strides = [1, 1, 1]} : vector<8x16x16xf32> to vector<8x16x15xf32>
    %7 = arith.subf %5, %6 : vector<8x16x15xf32>
    %8 = math.absf %7 : vector<8x16x15xf32>
    %9 = vector.shape_cast %4 : vector<8x15x16xf32> to vector<1x8x15x16xf32>
    %cst = arith.constant dense<0.000000e+00> : vector<1xf32>
    %10 = vector.multi_reduction <add>, %9, %cst [1, 2, 3] : vector<1x8x15x16xf32> to vector<1xf32>
    %11 = vector.shape_cast %10 : vector<1xf32> to vector<1x1x1x1xf32>
    %12 = vector.extract %11[0, 0, 0, 0] : f32 from vector<1x1x1x1xf32>
    %c0_2 = arith.constant 0 : index
    %c0_3 = arith.constant 0 : index
    %13 = memref.load %arg2[%c0_2, %c0_3] : memref<1x2xf32, #tpu.memory_space<smem>>
    memref.store %12, %arg2[%c0_2, %c0_3] : memref<1x2xf32, #tpu.memory_space<smem>>
    %14 = vector.shape_cast %8 : vector<8x16x15xf32> to vector<1x8x16x15xf32>
    %cst_4 = arith.constant dense<0.000000e+00> : vector<1xf32>
    %15 = vector.multi_reduction <add>, %14, %cst_4 [1, 2, 3] : vector<1x8x16x15xf32> to vector<1xf32>
    %16 = vector.shape_cast %15 : vector<1xf32> to vector<1x1x1x1xf32>
    %17 = vector.extract %16[0, 0, 0, 0] : f32 from vector<1x1x1x1xf32>
    %c0_5 = arith.constant 0 : index
    %c1 = arith.constant 1 : index
    %18 = memref.load %arg2[%c0_5, %c1] : memref<1x2xf32, #tpu.memory_space<smem>>
    memref.store %17, %arg2[%c0_5, %c1] : memref<1x2xf32, #tpu.memory_space<smem>>
    return
  }
  func.func @transform_0(%arg0: i32) -> (i32, i32, i32) {
    %c0_i32 = arith.constant 0 : i32
    %c0_i32_0 = arith.constant 0 : i32
    %c0_i32_1 = arith.constant 0 : i32
    return %arg0, %c0_i32, %c0_i32_0 : i32, i32, i32
  }
  func.func @transform_1(%arg0: i32) -> (i32, i32) {
    %c0_i32 = arith.constant 0 : i32
    %c0_i32_0 = arith.constant 0 : i32
    return %arg0, %c0_i32 : i32, i32
  }
}

</mosaic_0001>

<bundles_post_ra>
// kernel: tpu_custom_call.1
= control target key start
LH: loop header
LB: loop body
LE: loop exit
PB: predicated region body
PF: predicated region fallthrough
CT: control target
= control target key end

     0   :  { %6 = vsyncpa [#allocation3], 0  ;;  %s676_s0 = inlined_call_operand.hbm [shape: f32[8,16,16], index: 0, kind: input, shape index: {}]   ;;  %s677_s1 = inlined_call_operand.hbm [shape: f32[1,2], index: 1, kind: output, shape index: {}]  }
   0x1   :  { %7 = vsyncpa [#allocation4], 0  ;;  %s476_s6 = smov [#allocation2]   ;;  %s440_s10 = scalar_lea.hbm %s676_s0, 2048 }
   0x2   :  { %s13_s7 = sshll.u32 %s476_s6, 4  ;;  %p441_p0 = scmp.ne.s32.totalorder %s676_s0, %s440_s10  ;;  %s14_s7 = int_to_ptr.vmem [resolvable:$true] %s13_s7 }
   0x3   :  { %p444_p1 = scmp.lt.u32.totalorder %s440_s10, %s676_s0 }
   0x5   :  { %p446_p2 = pnand %p444_p1, %p441_p0 }
   0x7   :  { %449 = shalt.err (!%p446_p2)
}
   0x8   :  { %s450_s15 = scalar_lea.vmem %s14_s7, 2048  ;;  %p455_p4 = scmp.lt.s32.totalorder %s14_s7, %s14_s7 }
   0x9   :  { %p451_p3 = scmp.ne.s32.totalorder %s14_s7, %s450_s15  ;;  %p456_p5 = scmp.lt.s32.totalorder %s450_s15, %s450_s15 }
   0xb   :  { %p457_p6 = por %p456_p5, %p455_p4 }
   0xd   :  { %p458_p7 = pnand %p457_p6, %p451_p3 }
   0xf   :  { %461 = shalt.err (!%p458_p7)
}
  0x10   :  { %s477_s16 = smov 128   ;;  %s478_s17 = smov 8  }
  0x11   :  { %19 = dma.hbm_to_vmem [thread:$0]  %s676_s0, 2048, %s14_s7, [#allocation3], %s477_s16, %s477_s16, %s478_s17  }
  0x12   :  { %472 = dma.done.wait [#allocation3], 2048  }
  0x13   :  { %473 = vsyncadd [#allocation3], 4294965248  ;;  %v504_v0 = vld [vmem:[#allocation2] sm:$0xff]  ;;  %v506_v1 = vld [vmem:[#allocation2 + $0x10] sm:$0xff]  ;;  %s479_s20 = smov 1   ;;  %vm55_vm0 = vcmask 1040384  }
  0x14   :  { %128 = vrot.lane.b32.xlu0 %v504_v0, %s479_s20  ;;  %132 = vrot.lane.b32.xlu1 %v506_v1, %s479_s20  ;;  %v510_v2 = vld [vmem:[#allocation2 + $0x8] sm:$0xff]  ;;  %v512_v3 = vld [vmem:[#allocation2 + $0x18] sm:$0xff]  ;;  %v516_v4 = vld [vmem:[#allocation2 + $0x20] sm:$0xff]  ;;  %v56_v16 = vrot.slane %v504_v0, 7  ;;  %v59_v18 = vrot.slane %v506_v1, 7  ;;  %vm224_vm1 = vcmask 1046528  }
  0x15   :  { %v518_v5 = vld [vmem:[#allocation2 + $0x28] sm:$0xff]  ;;  %v522_v6 = vld [vmem:[#allocation2 + $0x30] sm:$0xff]  ;;  %v524_v7 = vld [vmem:[#allocation2 + $0x38] sm:$0xff]  ;;  %v57_v17 = vrot.slane %v510_v2, 7  ;;  %v60_v20 = vrot.slane %v512_v3, 7  ;;  %v62_v28 = vrot.slane %v516_v4, 7 }
  0x16   :  { %v528_v8 = vld [vmem:[#allocation2 + $0x40] sm:$0xff]  ;;  %v530_v9 = vld [vmem:[#allocation2 + $0x48] sm:$0xff]  ;;  %v534_v10 = vld [vmem:[#allocation2 + $0x50] sm:$0xff]  ;;  %v96_v21 = vsub.f32 %v504_v0, %v56_v16  ;;  %v98_v25 = vsub.f32 %v506_v1, %v59_v18  ;;  %v63_v29 = vrot.slane %v518_v5, 7  ;;  %vm265_vm2 = vcmask 130048   ;;  %s480_s0 = smov 127  }
  0x17   :  { %v536_v11 = vld [vmem:[#allocation2 + $0x58] sm:$0xff]  ;;  %v540_v12 = vld [vmem:[#allocation2 + $0x60] sm:$0xff]  ;;  %v542_v13 = vld [vmem:[#allocation2 + $0x68] sm:$0xff]  ;;  %v58_v19 = vsel %vm55_vm0, %v56_v16, %v57_v17  ;;  %v61_v23 = vsel %vm55_vm0, %v59_v18, %v60_v20  ;;  %vm267_vm3 = vcmask 129024   ;;  %v100_v35 = vsub.f32 %v516_v4, %v62_v28  ;;  %s462_s25 = scalar_lea.hbm %s677_s1, 16 }
  0x18   :  { %130 = vrot.lane.b32.xlu0 %v510_v2, %s479_s20  ;;  %134 = vrot.lane.b32.xlu1 %v512_v3, %s479_s20  ;;  %v546_v14 = vld [vmem:[#allocation2 + $0x70] sm:$0xff]  ;;  %v548_v15 = vld [vmem:[#allocation2 + $0x78] sm:$0xff]  ;;  %v97_v22 = vsub.f32 %v510_v2, %v58_v19  ;;  %v112_v24 = vand.u32 2147483647, %v96_v21  ;;  %v99_v27 = vsub.f32 %v512_v3, %v61_v23  ;;  %v114_v31 = vand.u32 2147483647, %v98_v25  ;;  %p463_p8 = scmp.ne.s32.totalorder %s677_s1, %s462_s25  ;;  %p466_p9 = scmp.lt.u32.totalorder %s462_s25, %s677_s1 }
  0x19   :  { %v64_v34 = vsel %vm55_vm0, %v62_v28, %v63_v29  ;;  %v65_v40 = vrot.slane %v522_v6, 7  ;;  %v66_v41 = vrot.slane %v524_v7, 7  ;;  %v116_v49 = vand.u32 2147483647, %v100_v35 }
  0x1a   :  { %v113_v26 = vand.u32 2147483647, %v97_v22  ;;  %v225_v30 = vrot.slane %v112_v24, 1  ;;  %v115_v33 = vand.u32 2147483647, %v99_v27  ;;  %v228_v36 = vrot.slane %v114_v31, 1  ;;  %p468_p10 = pnand %p466_p9, %p463_p8 }
  0x1b   :  { %v101_v39 = vsub.f32 %v518_v5, %v64_v34  ;;  %v67_v51 = vsel %vm55_vm0, %v65_v40, %v66_v41  ;;  %v231_v60 = vrot.slane %v116_v49, 1  ;;  %v102_v62 = vsub.f32 %v522_v6, %v65_v40 }
  0x1c   :  { %136 = vrot.lane.b32.xlu0 %v516_v4, %s479_s20  ;;  %138 = vrot.lane.b32.xlu1 %v518_v5, %s479_s20  ;;  %v226_v32 = vrot.slane %v113_v26, 1  ;;  %v229_v38 = vrot.slane %v115_v33, 1  ;;  %v103_v63 = vsub.f32 %v524_v7, %v67_v51  ;;  %vm373_vm4 = vcmask 121856  }
  0x1d   :  { %v117_v50 = vand.u32 2147483647, %v101_v39  ;;  %v118_v23 = vand.u32 2147483647, %v102_v62 }
  0x1e   :  { %v227_v37 = vsel %vm224_vm1, %v225_v30, %v226_v32  ;;  %v268_v45 = vsel %vm267_vm3, %v226_v32, 0.0  ;;  %v230_v48 = vsel %vm224_vm1, %v228_v36, %v229_v38  ;;  %v119_v24 = vand.u32 2147483647, %v103_v63 }
  0x1f   :  { %v266_v44 = vsel %vm265_vm2, %v227_v37, 0.0  ;;  %v270_v56 = vsel %vm265_vm2, %v230_v48, 0.0  ;;  %v232_v61 = vrot.slane %v117_v50, 1  ;;  %v71_v36 = vrot.slane %v534_v10, 7 }
  0x20   :  { %140 = vrot.lane.b32.xlu0 %v522_v6, %s479_s20  ;;  %142 = vrot.lane.b32.xlu1 %v524_v7, %s479_s20  ;;  %v269_v53 = vadd.f32 %v268_v45, %v266_v44  ;;  %v235_v33 = vrot.slane %v119_v24, 1  ;;  %v72_v37 = vrot.slane %v536_v11, 7 }
  0x21   :  { %v233_v22 = vsel %vm224_vm1, %v231_v60, %v232_v61 }
  0x22   :  { %v271_v17 = vadd.f32 %v270_v56, %v269_v53  ;;  %v274_v30 = vsel %vm265_vm2, %v233_v22, 0.0  ;;  %v106_v56 = vsub.f32 %v534_v10, %v71_v36 }
  0x24   :  { %144 = vrot.lane.b32.xlu0 %v528_v8, %s479_s20  ;;  %146 = vrot.lane.b32.xlu1 %v530_v9, %s479_s20 }
  0x28   :  { %148 = vrot.lane.b32.xlu0 %v534_v10, %s479_s20  ;;  %150 = vrot.lane.b32.xlu1 %v536_v11, %s479_s20 }
  0x2c   :  { %152 = vrot.lane.b32.xlu0 %v540_v12, %s479_s20  ;;  %154 = vrot.lane.b32.xlu1 %v542_v13, %s479_s20 }
  0x30   :  { %156 = vrot.lane.b32.xlu0 %v546_v14, %s479_s20  ;;  %158 = vrot.lane.b32.xlu1 %v548_v15, %s479_s20 }
  0x86   :  { %v129_v42 = vpop.permute.xlu0 %128  ;;  %v133_v43 = vpop.permute.xlu1 %132 }
  0x87   :  { %v176_v46 = vsub.f32 %v504_v0, %v129_v42  ;;  %v178_v47 = vsub.f32 %v506_v1, %v133_v43  ;;  %v68_v0 = vrot.slane %v528_v8, 7  ;;  %v69_v1 = vrot.slane %v530_v9, 7 }
  0x89   :  { %v192_v52 = vand.u32 2147483647, %v176_v46  ;;  %v194_v57 = vand.u32 2147483647, %v178_v47  ;;  %v70_v25 = vsel %vm55_vm0, %v68_v0, %v69_v1  ;;  %v104_v34 = vsub.f32 %v528_v8, %v68_v0 }
  0x8a   :  { %v131_v54 = vpop.permute.xlu0 %130  ;;  %v135_v55 = vpop.permute.xlu1 %134  ;;  %v105_v35 = vsub.f32 %v530_v9, %v70_v25  ;;  %v73_v47 = vsel %vm55_vm0, %v71_v36, %v72_v37  ;;  %v280_v0 = vsel %vm267_vm3, %v235_v33, 0.0 }
  0x8b   :  { %v177_v58 = vsub.f32 %v510_v2, %v131_v54  ;;  %325 = vrot.lane.b32.xlu0 %v192_v52, %s480_s0  ;;  %v179_v59 = vsub.f32 %v512_v3, %v135_v55  ;;  %v272_v2 = vsel %vm267_vm3, %v229_v38, 0.0  ;;  %v120_v45 = vand.u32 2147483647, %v104_v34 }
  0x8c   :  { %v273_v27 = vadd.f32 %v272_v2, %v271_v17  ;;  %v121_v46 = vand.u32 2147483647, %v105_v35  ;;  %v122_v17 = vand.u32 2147483647, %v106_v56 }
  0x8d   :  { %v193_v16 = vand.u32 2147483647, %v177_v58  ;;  %v195_v20 = vand.u32 2147483647, %v179_v59  ;;  %v237_v54 = vrot.slane %v120_v45, 1  ;;  %v74_v58 = vrot.slane %v540_v12, 7 }
  0x8e   :  { %v137_v18 = vpop.permute.xlu0 %136  ;;  %v139_v19 = vpop.permute.xlu1 %138  ;;  %v275_v39 = vadd.f32 %v274_v30, %v273_v27  ;;  %v238_v55 = vrot.slane %v121_v46, 1  ;;  %v75_v59 = vrot.slane %v542_v13, 7  ;;  %v77_v30 = vrot.slane %v546_v14, 7 }
  0x8f   :  { %329 = vrot.lane.b32.xlu0 %v194_v57, %s480_s0  ;;  %327 = vrot.lane.b32.xlu1 %v193_v16, %s480_s0  ;;  %v180_v3 = vsub.f32 %v516_v4, %v137_v18  ;;  %v181_v21 = vsub.f32 %v518_v5, %v139_v19  ;;  %v234_v5 = vrot.slane %v118_v23, 1  ;;  %v107_v57 = vsub.f32 %v536_v11, %v73_v47 }
  0x90   :  { %v76_v19 = vsel %vm55_vm0, %v74_v58, %v75_v59 }
  0x91   :  { %v196_v26 = vand.u32 2147483647, %v180_v3  ;;  %v197_v31 = vand.u32 2147483647, %v181_v21  ;;  %v236_v44 = vsel %vm224_vm1, %v234_v5, %v235_v33  ;;  %v123_v18 = vand.u32 2147483647, %v107_v57 }
  0x92   :  { %v141_v28 = vpop.permute.xlu0 %140  ;;  %v143_v29 = vpop.permute.xlu1 %142  ;;  %v278_v52 = vsel %vm265_vm2, %v236_v44, 0.0  ;;  %v284_v5 = vsel %vm267_vm3, %v238_v55, 0.0 }
  0x93   :  { %331 = vrot.lane.b32.xlu1 %v195_v20, %s480_s0  ;;  %v182_v32 = vsub.f32 %v522_v6, %v141_v28  ;;  %333 = vrot.lane.b32.xlu0 %v196_v26, %s480_s0  ;;  %v183_v4 = vsub.f32 %v524_v7, %v143_v29  ;;  %v276_v6 = vsel %vm267_vm3, %v232_v61, 0.0  ;;  %v240_v26 = vrot.slane %v122_v17, 1 }
  0x94   :  { %v277_v49 = vadd.f32 %v276_v6, %v275_v39  ;;  %v241_v27 = vrot.slane %v123_v18, 1  ;;  %v108_v28 = vsub.f32 %v540_v12, %v74_v58  ;;  %v109_v29 = vsub.f32 %v542_v13, %v76_v19 }
  0x95   :  { %v198_v38 = vand.u32 2147483647, %v182_v32  ;;  %v199_v42 = vand.u32 2147483647, %v183_v4  ;;  %v110_v39 = vsub.f32 %v546_v14, %v77_v30 }
  0x96   :  { %v145_v40 = vpop.permute.xlu0 %144  ;;  %v147_v41 = vpop.permute.xlu1 %146  ;;  %v279_v61 = vadd.f32 %v278_v52, %v277_v49  ;;  %v242_v34 = vsel %vm224_vm1, %v240_v26, %v241_v27  ;;  %v124_v35 = vand.u32 2147483647, %v108_v28  ;;  %v125_v36 = vand.u32 2147483647, %v109_v29 }
  0x97   :  { %335 = vrot.lane.b32.xlu1 %v197_v31, %s480_s0  ;;  %v184_v7 = vsub.f32 %v528_v8, %v145_v40  ;;  %337 = vrot.lane.b32.xlu0 %v198_v38, %s480_s0  ;;  %v185_v43 = vsub.f32 %v530_v9, %v147_v41  ;;  %v78_v31 = vrot.slane %v548_v15, 7  ;;  %v286_v37 = vsel %vm265_vm2, %v242_v34, 0.0 }
  0x98   :  { %v281_v20 = vadd.f32 %v280_v0, %v279_v61  ;;  %v243_v38 = vrot.slane %v124_v35, 1  ;;  %v244_v41 = vrot.slane %v125_v36, 1 }
  0x99   :  { %v200_v48 = vand.u32 2147483647, %v184_v7  ;;  %v201_v53 = vand.u32 2147483647, %v185_v43  ;;  %v126_v7 = vand.u32 2147483647, %v110_v39 }
  0x9a   :  { %v149_v50 = vpop.permute.xlu0 %148  ;;  %v151_v51 = vpop.permute.xlu1 %150  ;;  %v245_v44 = vsel %vm224_vm1, %v243_v38, %v244_v41 }
  0x9b   :  { %339 = vrot.lane.b32.xlu1 %v199_v42, %s480_s0  ;;  %v186_v8 = vsub.f32 %v534_v10, %v149_v50  ;;  %341 = vrot.lane.b32.xlu0 %v200_v48, %s480_s0  ;;  %v187_v9 = vsub.f32 %v536_v11, %v151_v51  ;;  %v239_v11 = vsel %vm224_vm1, %v237_v54, %v238_v55  ;;  %v288_v42 = vsel %vm267_vm3, %v241_v27, 0.0 }
  0x9c   :  { %v282_v22 = vsel %vm265_vm2, %v239_v11, 0.0  ;;  %v290_v46 = vsel %vm265_vm2, %v245_v44, 0.0  ;;  %v246_v47 = vrot.slane %v126_v7, 1  ;;  %v292_v50 = vsel %vm267_vm3, %v244_v41, 0.0 }
  0x9d   :  { %v202_v60 = vand.u32 2147483647, %v186_v8  ;;  %v203_v1 = vand.u32 2147483647, %v187_v9  ;;  %v283_v4 = vadd.f32 %v282_v22, %v281_v20 }
  0x9e   :  { %v153_v62 = vpop.permute.xlu0 %152  ;;  %v155_v63 = vpop.permute.xlu1 %154 }
  0x9f   :  { %343 = vrot.lane.b32.xlu1 %v201_v53, %s480_s0  ;;  %v188_v16 = vsub.f32 %v540_v12, %v153_v62  ;;  %345 = vrot.lane.b32.xlu0 %v202_v60, %s480_s0  ;;  %v189_v10 = vsub.f32 %v542_v13, %v155_v63  ;;  %v79_v12 = vsel %vm55_vm0, %v77_v30, %v78_v31 }
  0xa0   :  { %v285_v13 = vadd.f32 %v284_v5, %v283_v4  ;;  %v111_v40 = vsub.f32 %v548_v15, %v79_v12 }
  0xa1   :  { %v204_v2 = vand.u32 2147483647, %v188_v16  ;;  %v205_v23 = vand.u32 2147483647, %v189_v10 }
  0xa2   :  { %v157_v3 = vpop.permute.xlu0 %156  ;;  %v159_v21 = vpop.permute.xlu1 %158  ;;  %v287_v6 = vadd.f32 %v286_v37, %v285_v13  ;;  %v127_v43 = vand.u32 2147483647, %v111_v40 }
  0xa3   :  { %347 = vrot.lane.b32.xlu1 %v203_v1, %s480_s0  ;;  %v190_v24 = vsub.f32 %v546_v14, %v157_v3  ;;  %349 = vrot.lane.b32.xlu0 %v204_v2, %s480_s0  ;;  %v191_v25 = vsub.f32 %v548_v15, %v159_v21 }
  0xa4   :  { %v289_v45 = vadd.f32 %v288_v42, %v287_v6  ;;  %v247_v48 = vrot.slane %v127_v43, 1 }
  0xa5   :  { %v206_v32 = vand.u32 2147483647, %v190_v24  ;;  %v207_v33 = vand.u32 2147483647, %v191_v25 }
  0xa6   :  { %v291_v49 = vadd.f32 %v290_v46, %v289_v45  ;;  %v248_v14 = vsel %vm224_vm1, %v246_v47, %v247_v48  ;;  %v296_v53 = vsel %vm267_vm3, %v247_v48, 0.0 }
  0xa7   :  { %351 = vrot.lane.b32.xlu1 %v205_v23, %s480_s0  ;;  %353 = vrot.lane.b32.xlu0 %v206_v32, %s480_s0  ;;  %v294_v15 = vsel %vm265_vm2, %v248_v14, 0.0 }
  0xa8   :  { %v293_v51 = vadd.f32 %v292_v50, %v291_v49 }
  0xaa   :  { %v295_v52 = vadd.f32 %v294_v15, %v293_v51 }
  0xab   :  { %355 = vrot.lane.b32.xlu1 %v207_v33, %s480_s0 }
  0xac   :  { %v297_v8 = vadd.f32 %v296_v53, %v295_v52 }
  0xc6   :  { %298 = vadd.xlane.f32.xlu0 %v297_v8 }
  0xfd   :  { %v326_v9 = vpop.permute.xlu0 %325 }
  0xfe   :  { %v374_v56 = vsel %vm373_vm4, %v326_v9, 0.0 }
 0x101   :  { %v328_v54 = vpop.permute.xlu1 %327  ;;  %v330_v55 = vpop.permute.xlu0 %329 }
 0x102   :  { %v375_v57 = vsel %vm373_vm4, %v328_v54, 0.0  ;;  %v377_v59 = vsel %vm373_vm4, %v330_v55, 0.0 }
 0x103   :  { %v376_v58 = vadd.f32 %v375_v57, %v374_v56 }
 0x105   :  { %v378_v60 = vadd.f32 %v377_v59, %v376_v58  ;;  %v332_v61 = vpop.permute.xlu1 %331  ;;  %v334_v62 = vpop.permute.xlu0 %333 }
 0x106   :  { %v379_v63 = vsel %vm373_vm4, %v332_v61, 0.0  ;;  %v381_v0 = vsel %vm373_vm4, %v334_v62, 0.0 }
 0x107   :  { %v380_v1 = vadd.f32 %v379_v63, %v378_v60 }
 0x109   :  { %v382_v16 = vadd.f32 %v381_v0, %v380_v1  ;;  %v336_v10 = vpop.permute.xlu1 %335  ;;  %v338_v11 = vpop.permute.xlu0 %337 }
 0x10a   :  { %v383_v17 = vsel %vm373_vm4, %v336_v10, 0.0  ;;  %v385_v18 = vsel %vm373_vm4, %v338_v11, 0.0 }
 0x10b   :  { %v384_v19 = vadd.f32 %v383_v17, %v382_v16 }
 0x10d   :  { %v386_v2 = vadd.f32 %v385_v18, %v384_v19  ;;  %v340_v20 = vpop.permute.xlu1 %339  ;;  %v342_v3 = vpop.permute.xlu0 %341 }
 0x10e   :  { %v387_v21 = vsel %vm373_vm4, %v340_v20, 0.0  ;;  %v389_v22 = vsel %vm373_vm4, %v342_v3, 0.0 }
 0x10f   :  { %v388_v23 = vadd.f32 %v387_v21, %v386_v2 }
 0x111   :  { %v390_v24 = vadd.f32 %v389_v22, %v388_v23  ;;  %v344_v25 = vpop.permute.xlu1 %343  ;;  %v346_v26 = vpop.permute.xlu0 %345 }
 0x112   :  { %v391_v27 = vsel %vm373_vm4, %v344_v25, 0.0  ;;  %v393_v28 = vsel %vm373_vm4, %v346_v26, 0.0 }
 0x113   :  { %v392_v29 = vadd.f32 %v391_v27, %v390_v24 }
 0x115   :  { %v394_v30 = vadd.f32 %v393_v28, %v392_v29  ;;  %v348_v31 = vpop.permute.xlu1 %347  ;;  %v350_v32 = vpop.permute.xlu0 %349 }
 0x116   :  { %v395_v4 = vsel %vm373_vm4, %v348_v31, 0.0  ;;  %v397_v5 = vsel %vm373_vm4, %v350_v32, 0.0 }
 0x117   :  { %v396_v33 = vadd.f32 %v395_v4, %v394_v30 }
 0x119   :  { %v398_v34 = vadd.f32 %v397_v5, %v396_v33  ;;  %v352_v35 = vpop.permute.xlu1 %351  ;;  %v354_v36 = vpop.permute.xlu0 %353 }
 0x11a   :  { %v399_v12 = vsel %vm373_vm4, %v352_v35, 0.0  ;;  %v401_v13 = vsel %vm373_vm4, %v354_v36, 0.0 }
 0x11b   :  { %v400_v37 = vadd.f32 %v399_v12, %v398_v34 }
 0x11d   :  { %v402_v38 = vadd.f32 %v401_v13, %v400_v37  ;;  %v356_v39 = vpop.permute.xlu1 %355 }
 0x11e   :  { %v403_v40 = vsel %vm373_vm4, %v356_v39, 0.0 }
 0x11f   :  { %v404_v41 = vadd.f32 %v403_v40, %v402_v38 }
 0x121   :  { %405 = vadd.xlane.f32.xlu1 %v404_v41 }
 0x153   :  { %v299_v6 = vpop.xlane.xlu0 %298 }
 0x154   :  { %v300_v42 = vrot.slane %v299_v6, 4 }
 0x156   :  { %v301_v7 = vadd.f32 %v300_v42, %v299_v6 }
 0x158   :  { %v302_v43 = vrot.slane %v301_v7, 2 }
 0x15a   :  { %v303_v44 = vadd.f32 %v302_v43, %v301_v7 }
 0x15c   :  { %v304_v45 = vrot.slane %v303_v44, 1 }
 0x15e   :  { %v305_v46 = vadd.f32 %v304_v45, %v303_v44 }
 0x160   :  { %430 = vpush %v305_v46 }
 0x191   :  { %s431_s21 = spop %430 }
 0x192   :  { %308 = sst [smem:[#allocation5]] %s431_s21 }
 0x1ae   :  { %v406_v47 = vpop.xlane.xlu1 %405 }
 0x1af   :  { %v407_v48 = vrot.slane %v406_v47, 4 }
 0x1b1   :  { %v408_v49 = vadd.f32 %v407_v48, %v406_v47 }
 0x1b3   :  { %v409_v50 = vrot.slane %v408_v49, 2 }
 0x1b5   :  { %v410_v14 = vadd.f32 %v409_v50, %v408_v49 }
 0x1b7   :  { %v411_v51 = vrot.slane %v410_v14, 1 }
 0x1b9   :  { %v412_v15 = vadd.f32 %v411_v51, %v410_v14 }
 0x1bb   :  { %432 = vpush %v412_v15 }
 0x1ec   :  { %s433_s22 = spop %432 }
 0x1ed   :  { %415 = sst [smem:[#allocation5 + $0x1]] %s433_s22 }
 0x1ee   :  { %471 = shalt.err (!%p468_p10)
}
 0x1ef   :  { %s481_s30 = smov [#allocation5]  }
 0x1f0   :  { %423 = dma.smem_to_hbm %s481_s30, 16, %s677_s1, [#allocation4]  }
 0x1f1   :  { %474 = dma.done.wait [#allocation4], 16  }
 0x1f2   :  { %475 = vsyncadd [#allocation4], 4294967280 }
 0x1f3   :  { %427 = sfence }
 0x1f4   :  { %428 = vsyncpa [#allocation3], 1 }
 0x1f5   :  { %429 = vsyncpa [#allocation4], 1 }

</bundles_post_ra>
